<compile_context>
chip_gen: v6e
topology: v6e:2x2x1
jax: 0.10.0
libtpu: 0.0.40
codegen_flags: <defaults>
</compile_context>

<pallas_src>
import functools

import jax
import jax.numpy as jnp
from jax.experimental import pallas as pl
from jax.experimental.pallas import tpu as pltpu


# ----------------------------- Pallas kernel ------------------------------- #
def _lightgcn_kernel(n_layers, a_ref, x0_ref, out_ref):
    # a_ref:   (N, N) bf16 symmetric-normalized block adjacency [[0,A],[A^T,0]]
    # x0_ref:  (N, D) f32 layer-0 embeddings (users ++ items)
    # out_ref: (N, D) f32 mean over layer embeddings
    x0 = x0_ref[...]                       # f32
    a = a_ref[...]                         # bf16, resident in VMEM
    x = x0.astype(jnp.bfloat16)            # current-layer X carried in bf16
    out = x0                               # running sum in f32

    # n_layers is a static Python int -> fully unrolled at trace time.
    for _ in range(n_layers):
        new = jnp.dot(a, x, preferred_element_type=jnp.float32)   # MXU, f32 acc
        x = new.astype(jnp.bfloat16)
        out = out + new

    out_ref[...] = out * (1.0 / float(n_layers + 1))


def lightgcn_forward(user_emb, item_emb, norm_adj_bf16, *, n_layers):
    """Equivalent of LightGCN.forward():
       x0 = concat(user_emb, item_emb); x_{l+1} = A_norm @ x_l;
       out = mean over layers 0..n_layers; return (out[:U], out[U:]).
       norm_adj_bf16 is the dense bf16 (U+I, U+I) symmetric-normalized
       adjacency [[0, A_ui], [A_ui^T, 0]], built once (the graph is static)."""
    n_users, d = user_emb.shape
    n_items = item_emb.shape[0]
    n = n_users + n_items

    x0 = jnp.concatenate([user_emb, item_emb], axis=0).astype(jnp.float32)

    flops = 2 * n_layers * n * n * d                       # one N x N x D mm per layer
    bytes_accessed = 2 * n * n + 2 * 4 * n * d             # bf16 A + f32 x0 in + f32 out

    kernel = functools.partial(_lightgcn_kernel, n_layers)

    out = pl.pallas_call(
        kernel,
        out_shape=jax.ShapeDtypeStruct((n, d), jnp.float32),
        # No grid: single invocation, whole (tiny) arrays resident in VMEM,
        # no double-buffering of single-step inputs.
        in_specs=[
            pl.BlockSpec(memory_space=pltpu.MemorySpace.VMEM),   # adjacency
            pl.BlockSpec(memory_space=pltpu.MemorySpace.VMEM),   # x0
        ],
        out_specs=pl.BlockSpec(memory_space=pltpu.MemorySpace.VMEM),
        cost_estimate=pl.CostEstimate(
            flops=flops, transcendentals=0, bytes_accessed=bytes_accessed),
    )(norm_adj_bf16, x0)

    return out[:n_users], out[n_users:]


# --------------------------- deterministic setup ---------------------------- #
def xavier_uniform(key, shape):
    # PyTorch nn.init.xavier_uniform_ on an Embedding weight (num_emb, dim):
    # fan_out = num_emb, fan_in = dim.
    fan_out, fan_in = shape
    bound = (6.0 / (fan_in + fan_out)) ** 0.5
    return jax.random.uniform(key, shape, jnp.float32, -bound, bound)


def build_norm_adj_ui(key, n_users, n_items):
    """User-item block of the symmetric-normalized bipartite adjacency
    D^-1/2 A D^-1/2 (dense synthetic stand-in for the ml-100k sparse graph)."""
    inter = jax.random.bernoulli(key, p=0.15, shape=(n_users, n_items))
    r = inter.astype(jnp.float32)
    deg_u = r.sum(axis=1)
    deg_i = r.sum(axis=0)
    du = jnp.where(deg_u > 0, deg_u ** -0.5, 0.0)
    di = jnp.where(deg_i > 0, deg_i ** -0.5, 0.0)
    return du[:, None] * r * di[None, :]


# ----------------------------------- main ----------------------------------- #
if __name__ == "__main__":
    n_users, n_items = 24, 40          # N = 64
    latent_dim = 64
    n_layers = 3

    key = jax.random.PRNGKey(0)
    k_user, k_item, k_adj = jax.random.split(key, 3)

    user_emb = xavier_uniform(k_user, (n_users, latent_dim))
    item_emb = xavier_uniform(k_item, (n_items, latent_dim))
    a_ui = build_norm_adj_ui(k_adj, n_users, n_items)

    # Full square normalized adjacency, built and bf16-quantized ONCE outside
    # the jitted forward (the graph is static across calls).
    norm_adj = jnp.block([
        [jnp.zeros((n_users, n_users), jnp.float32), a_ui],
        [a_ui.T, jnp.zeros((n_items, n_items), jnp.float32)],
    ])
    norm_adj_bf16 = norm_adj.astype(jnp.bfloat16)

    fwd = jax.jit(functools.partial(lightgcn_forward, n_layers=n_layers))
    user_out, item_out = fwd(user_emb, item_emb, norm_adj_bf16)
    jax.block_until_ready((user_out, item_out))

    # --- sanity check 1: pure-JAX reference with the SAME bf16 recipe -------- #
    x0 = jnp.concatenate([user_emb, item_emb], axis=0)
    acc = x0
    xl = x0.astype(jnp.bfloat16)
    for _ in range(n_layers):
        new = jnp.dot(norm_adj_bf16, xl, preferred_element_type=jnp.float32)
        xl = new.astype(jnp.bfloat16)
        acc = acc + new
    ref = acc / (n_layers + 1)
    assert jnp.allclose(user_out, ref[:n_users], atol=1e-4, rtol=1e-4)
    assert jnp.allclose(item_out, ref[n_users:], atol=1e-4, rtol=1e-4)

    # --- sanity check 2 (loose): f32 dense spec of the original module ------- #
    x = x0
    layers = [x]
    for _ in range(n_layers):
        x = norm_adj @ x
        layers.append(x)
    ref_f32 = jnp.stack(layers, axis=1).mean(axis=1)
    assert jnp.allclose(user_out, ref_f32[:n_users], atol=2e-2)   # bf16-A quantization slack
    assert jnp.allclose(item_out, ref_f32[n_users:], atol=2e-2)

    print("KERNEL_OK")
</pallas_src>

<mosaic_0001>
module attributes {stable_mosaic.version = 11 : i64} {
  func.func @_lightgcn_kernel(%arg0: memref<64x64xbf16, #tpu.memory_space<vmem>>, %arg1: memref<64x64xf32, #tpu.memory_space<vmem>>, %arg2: memref<64x64xf32, #tpu.memory_space<vmem>>) attributes {dimension_semantics = [], scalar_prefetch = 0 : i64, scratch_operands = 0 : i64, tpu.core_type = #tpu.core_type<tc>} {
    %c0 = arith.constant 0 : index
    %c0_0 = arith.constant 0 : index
    %0 = vector.load %arg1[%c0, %c0_0] : memref<64x64xf32, #tpu.memory_space<vmem>>, vector<64x64xf32>
    %c0_1 = arith.constant 0 : index
    %c0_2 = arith.constant 0 : index
    %1 = vector.load %arg0[%c0_1, %c0_2] : memref<64x64xbf16, #tpu.memory_space<vmem>>, vector<64x64xbf16>
    %2 = arith.truncf %0 : vector<64x64xf32> to vector<64x64xbf16>
    %cst = arith.constant dense<0.000000e+00> : vector<64x64xf32>
    %3 = tpu.matmul %1, %2, %cst {dimension_numbers = #tpu.dot_dimension_numbers<[1], [0], [0], [1], [0, 0, 1, 1], [], []>} : vector<64x64xbf16>, vector<64x64xbf16>, vector<64x64xf32> -> vector<64x64xf32>
    %4 = arith.truncf %3 : vector<64x64xf32> to vector<64x64xbf16>
    %5 = arith.addf %0, %3 : vector<64x64xf32>
    %cst_3 = arith.constant dense<0.000000e+00> : vector<64x64xf32>
    %6 = tpu.matmul %1, %4, %cst_3 {dimension_numbers = #tpu.dot_dimension_numbers<[1], [0], [0], [1], [0, 0, 1, 1], [], []>} : vector<64x64xbf16>, vector<64x64xbf16>, vector<64x64xf32> -> vector<64x64xf32>
    %7 = arith.truncf %6 : vector<64x64xf32> to vector<64x64xbf16>
    %8 = arith.addf %5, %6 : vector<64x64xf32>
    %cst_4 = arith.constant dense<0.000000e+00> : vector<64x64xf32>
    %9 = tpu.matmul %1, %7, %cst_4 {dimension_numbers = #tpu.dot_dimension_numbers<[1], [0], [0], [1], [0, 0, 1, 1], [], []>} : vector<64x64xbf16>, vector<64x64xbf16>, vector<64x64xf32> -> vector<64x64xf32>
    %10 = arith.addf %8, %9 : vector<64x64xf32>
    %cst_5 = arith.constant 2.500000e-01 : f32
    %11 = vector.broadcast %cst_5 : f32 to vector<64x64xf32>
    %12 = arith.mulf %10, %11 : vector<64x64xf32>
    %c0_6 = arith.constant 0 : index
    %c0_7 = arith.constant 0 : index
    %13 = vector.load %arg2[%c0_6, %c0_7] : memref<64x64xf32, #tpu.memory_space<vmem>>, vector<64x64xf32>
    tpu.vector_store %arg2[%c0_6, %c0_7], %12 {strides = array<i32>} : memref<64x64xf32, #tpu.memory_space<vmem>>, vector<64x64xf32>,
    return
  }
}

</mosaic_0001>

<bundles_post_ra>
// kernel: lightgcn_forward.1
= control target key start
LH: loop header
LB: loop body
LE: loop exit
PB: predicated region body
PF: predicated region fallthrough
CT: control target
= control target key end

     0   :  { %vm52_vm0 = vcmask 523264   ;;  %s537_s1 = inlined_call_operand.vmem [shape: f32[64,64], index: 1, kind: input, shape index: {}]   ;;  %s538_s0 = inlined_call_operand.vmem [shape: bf16[64,64], index: 0, kind: input, shape index: {}]   ;;  %s539_s2 = inlined_call_operand.vmem [shape: f32[64,64], index: 2, kind: output, shape index: {}]  }
   0x1   :  { %v430_v0 = vld [vmem:[%s537_s1 + $0x30] sm:$0xff]  ;;  %v435_v1 = vld [vmem:[%s537_s1 + $0x38] sm:$0xff]  ;;  %v440_v2 = vld [vmem:[%s537_s1 + $0x20] sm:$0xff] }
   0x2   :  { %v31_v3 = vpack.c.bf16 %v435_v1, %v430_v0  ;;  %v447_v4 = vld [vmem:[%s537_s1 + $0x28] sm:$0xff]  ;;  %v14_v6 = vld [vmem:[%s537_s1 + $0x10] sm:$0xff]  ;;  %v15_v7 = vld [vmem:[%s537_s1 + $0x18] sm:$0xff] }
   0x3   :  { %v30_v5 = vpack.c.bf16 %v447_v4, %v440_v2  ;;  %v408_v8 = vld [vmem:[%s538_s0] sm:$0xff]   ;;  %v29_v9 = vpack.c.bf16 %v15_v7, %v14_v6  ;;  %v13_v11 = vld [vmem:[%s537_s1 + $0x8] sm:$0xff]  ;;  %v410_v14 = vld [vmem:[%s538_s0 + $0x10] sm:$0xff]  }
   0x4   :  { %352 = vmatprep.subr.bf16.mxu0 %v31_v3  ;;  %360 = vmatprep.mubr.msk.bf16.mxu0 %vm52_vm0, %v408_v8  ;;  %v12_v10 = vld [vmem:[%s537_s1] sm:$0xff]  ;;  %v471_v13 = vld [vmem:[%s538_s0 + $0x8] sm:$0xff]   ;;  %v482_v15 = vld [vmem:[%s538_s0 + $0x18] sm:$0xff]  }
   0x5   :  { %353 = vmatpush3.bf16.msra.mxu0 %v31_v3  ;;  %376 = vmatprep.mubr.msk.bf16.mxu1 %vm52_vm0, %v408_v8  ;;  %v28_v12 = vpack.c.bf16 %v13_v11, %v12_v10 }
   0x6   :  { %354 = vmatprep.subr.bf16.mxu0 %v30_v5 }
   0x9   :  { %355 = vmatpush3.bf16.msra.mxu0 %v30_v5 }
   0xa   :  { %356 = vmatprep.subr.bf16.mxu0 %v29_v9 }
   0xd   :  { %357 = vmatpush3.bf16.msra.mxu0 %v29_v9 }
   0xe   :  { %358 = vmatprep.subr.bf16.mxu0 %v28_v12 }
  0x11   :  { %359 = vmatpush3.bf16.msra.mxu0 %v28_v12 }
  0x14   :  { %361 = vmatmul.mubr.msk.bf16.vlgmr.msra.gmra.mxu0 %vm52_vm0, %v471_v13 }
  0x15   :  { %364 = vmatprep.mubr.msk.bf16.mxu0 %vm52_vm0, %v410_v14 }
  0x1c   :  { %365 = vmatmul.mubr.msk.bf16.gmra.mxu0 %vm52_vm0, %v482_v15 }
  0x1d   :  { %392 = vmatprep.mubr.msk.bf16.mxu0 %vm52_vm0, %v408_v8 }
  0xd4   :  { %v362_v16 = vpop.f32.mrf.mxu0 }
  0xd5   :  { %v136_v28 = vadd.f32 %v362_v16, %v14_v6 }
  0xd6   :  { %v99_v17 = vpop.f32.mrf.mxu0 }
  0xd7   :  { %v134_v30 = vadd.f32 %v99_v17, %v12_v10 }
  0xd8   :  { %v363_v18 = vpop.f32.mrf.mxu0 }
  0xd9   :  { %v131_v26 = vpack.c.bf16 %v363_v18, %v362_v16  ;;  %v137_v33 = vadd.f32 %v363_v18, %v15_v7 }
  0xda   :  { %v102_v19 = vpop.f32.mrf.mxu0 }
  0xdb   :  { %v130_v27 = vpack.c.bf16 %v102_v19, %v99_v17  ;;  %v135_v36 = vadd.f32 %v102_v19, %v13_v11 }
  0xdc   :  { %v366_v20 = vpop.f32.mrf.mxu0 }
  0xdd   :  { %v140_v39 = vadd.f32 %v366_v20, %v430_v0 }
  0xde   :  { %v115_v21 = vpop.f32.mrf.mxu0 }
  0xdf   :  { %v138_v42 = vadd.f32 %v115_v21, %v440_v2 }
  0xe0   :  { %v367_v22 = vpop.f32.mrf.mxu0 }
  0xe1   :  { %v133_v23 = vpack.c.bf16 %v367_v22, %v366_v20  ;;  %v141_v45 = vadd.f32 %v367_v22, %v435_v1 }
  0xe2   :  { %v487_v24 = vpop.f32.mrf.mxu0 }
  0xe3   :  { %v132_v25 = vpack.c.bf16 %v487_v24, %v115_v21  ;;  %368 = vmatprep.subr.bf16.mxu1 %v133_v23  ;;  %v139_v58 = vadd.f32 %v487_v24, %v447_v4 }
  0xe4   :  { %369 = vmatpush3.bf16.msra.mxu1 %v133_v23 }
  0xe5   :  { %370 = vmatprep.subr.bf16.mxu1 %v132_v25 }
  0xe8   :  { %371 = vmatpush3.bf16.msra.mxu1 %v132_v25 }
  0xe9   :  { %372 = vmatprep.subr.bf16.mxu1 %v131_v26 }
  0xec   :  { %373 = vmatpush3.bf16.msra.mxu1 %v131_v26 }
  0xed   :  { %374 = vmatprep.subr.bf16.mxu1 %v130_v27 }
  0xf0   :  { %375 = vmatpush3.bf16.msra.mxu1 %v130_v27 }
  0xf3   :  { %377 = vmatmul.mubr.msk.bf16.vlgmr.msra.gmra.mxu1 %vm52_vm0, %v471_v13 }
  0xf4   :  { %380 = vmatprep.mubr.msk.bf16.mxu1 %vm52_vm0, %v410_v14 }
  0xfb   :  { %381 = vmatmul.mubr.msk.bf16.gmra.mxu1 %vm52_vm0, %v482_v15 }
  0xfc   :  { %396 = vmatprep.mubr.msk.bf16.mxu1 %vm52_vm0, %v410_v14 }
 0x1b3   :  { %v378_v29 = vpop.f32.mrf.mxu1 }
 0x1b4   :  { %v213_v31 = vadd.f32 %v378_v29, %v136_v28 }
 0x1b5   :  { %v176_v32 = vpop.f32.mrf.mxu1 }
 0x1b6   :  { %v211_v34 = vadd.f32 %v176_v32, %v134_v30 }
 0x1b7   :  { %v379_v35 = vpop.f32.mrf.mxu1 }
 0x1b8   :  { %v214_v37 = vadd.f32 %v379_v35, %v137_v33  ;;  %v208_v52 = vpack.c.bf16 %v379_v35, %v378_v29 }
 0x1b9   :  { %v179_v38 = vpop.f32.mrf.mxu1 }
 0x1ba   :  { %v212_v40 = vadd.f32 %v179_v38, %v135_v36  ;;  %v207_v53 = vpack.c.bf16 %v179_v38, %v176_v32 }
 0x1bb   :  { %v382_v41 = vpop.f32.mrf.mxu1 }
 0x1bc   :  { %v217_v43 = vadd.f32 %v382_v41, %v140_v39 }
 0x1bd   :  { %v192_v44 = vpop.f32.mrf.mxu1 }
 0x1be   :  { %v215_v46 = vadd.f32 %v192_v44, %v138_v42 }
 0x1bf   :  { %v383_v47 = vpop.f32.mrf.mxu1 }
 0x1c0   :  { %v210_v48 = vpack.c.bf16 %v383_v47, %v382_v41  ;;  %v218_v49 = vadd.f32 %v383_v47, %v141_v45 }
 0x1c1   :  { %v195_v50 = vpop.f32.mrf.mxu1 }
 0x1c2   :  { %v209_v51 = vpack.c.bf16 %v195_v50, %v192_v44  ;;  %384 = vmatprep.subr.bf16.mxu0 %v210_v48  ;;  %400 = vmatprep.subr.bf16.mxu1 %v210_v48  ;;  %v216_v1 = vadd.f32 %v195_v50, %v139_v58 }
 0x1c3   :  { %385 = vmatpush3.bf16.msra.mxu0 %v210_v48  ;;  %404 = vmatpush3.bf16.msra.mxu1 %v210_v48 }
 0x1c4   :  { %386 = vmatprep.subr.bf16.mxu0 %v209_v51  ;;  %401 = vmatprep.subr.bf16.mxu1 %v209_v51 }
 0x1c7   :  { %387 = vmatpush3.bf16.msra.mxu0 %v209_v51  ;;  %405 = vmatpush3.bf16.msra.mxu1 %v209_v51 }
 0x1c8   :  { %388 = vmatprep.subr.bf16.mxu0 %v208_v52  ;;  %402 = vmatprep.subr.bf16.mxu1 %v208_v52 }
 0x1cb   :  { %389 = vmatpush3.bf16.msra.mxu0 %v208_v52  ;;  %406 = vmatpush3.bf16.msra.mxu1 %v208_v52 }
 0x1cc   :  { %390 = vmatprep.subr.bf16.mxu0 %v207_v53  ;;  %403 = vmatprep.subr.bf16.mxu1 %v207_v53 }
 0x1cf   :  { %391 = vmatpush3.bf16.msra.mxu0 %v207_v53  ;;  %407 = vmatpush3.bf16.msra.mxu1 %v207_v53 }
 0x1d2   :  { %393 = vmatmul.mubr.msk.bf16.vlgmr.msra.gmra.mxu0 %vm52_vm0, %v471_v13  ;;  %397 = vmatmul.mubr.msk.bf16.vlgmr.msra.gmra.mxu1 %vm52_vm0, %v482_v15 }
 0x292   :  { %v394_v54 = vpop.f32.mrf.mxu0  ;;  %v398_v55 = vpop.f32.mrf.mxu1 }
 0x293   :  { %v286_v56 = vadd.f32 %v394_v54, %v213_v31  ;;  %v290_v57 = vadd.f32 %v398_v55, %v217_v43 }
 0x294   :  { %v253_v59 = vpop.f32.mrf.mxu0  ;;  %v269_v60 = vpop.f32.mrf.mxu1 }
 0x295   :  { %v294_v61 = vmul.f32 0.25, %v286_v56  ;;  %v298_v62 = vmul.f32 0.25, %v290_v57  ;;  %v284_v63 = vadd.f32 %v253_v59, %v211_v34  ;;  %v288_v0 = vadd.f32 %v269_v60, %v215_v46 }
 0x296   :  { %v395_v2 = vpop.f32.mrf.mxu0  ;;  %v399_v3 = vpop.f32.mrf.mxu1 }
 0x297   :  { %302 = vst.msk [vmem:[%s539_s2 + $0x10] sm:$0xff] %vm52_vm0, %v294_v61  ;;  %306 = vst.msk [vmem:[%s539_s2 + $0x30] sm:$0xff] %vm52_vm0, %v298_v62  ;;  %v292_v4 = vmul.f32 0.25, %v284_v63  ;;  %v296_v5 = vmul.f32 0.25, %v288_v0  ;;  %v287_v6 = vadd.f32 %v395_v2, %v214_v37  ;;  %v291_v7 = vadd.f32 %v399_v3, %v218_v49 }
 0x298   :  { %v256_v8 = vpop.f32.mrf.mxu0  ;;  %v272_v9 = vpop.f32.mrf.mxu1 }
 0x299   :  { %300 = vst.msk [vmem:[%s539_s2] sm:$0xff] %vm52_vm0, %v292_v4  ;;  %304 = vst.msk [vmem:[%s539_s2 + $0x20] sm:$0xff] %vm52_vm0, %v296_v5  ;;  %v295_v10 = vmul.f32 0.25, %v287_v6  ;;  %v299_v11 = vmul.f32 0.25, %v291_v7  ;;  %v285_v12 = vadd.f32 %v256_v8, %v212_v40  ;;  %v289_v13 = vadd.f32 %v272_v9, %v216_v1 }
 0x29b   :  { %303 = vst.msk [vmem:[%s539_s2 + $0x18] sm:$0xff] %vm52_vm0, %v295_v10  ;;  %307 = vst.msk [vmem:[%s539_s2 + $0x38] sm:$0xff] %vm52_vm0, %v299_v11  ;;  %v293_v14 = vmul.f32 0.25, %v285_v12  ;;  %v297_v15 = vmul.f32 0.25, %v289_v13 }
 0x29d   :  { %301 = vst.msk [vmem:[%s539_s2 + $0x8] sm:$0xff] %vm52_vm0, %v293_v14  ;;  %305 = vst.msk [vmem:[%s539_s2 + $0x28] sm:$0xff] %vm52_vm0, %v297_v15 }

</bundles_post_ra>
